<compile_context>
chip_gen: v7x
topology: tpu7x:2x2x1
jax: 0.10.0
libtpu: 0.0.40
codegen_flags: <defaults>
</compile_context>

<pallas_src>
import functools
import math

import jax
import jax.numpy as jnp
import numpy as np
from jax.experimental import pallas as pl
from jax.experimental.pallas import tpu as pltpu


def _ldam_kernel(logits_ref, target_ref, m_ref, out_ref,
                 m_scr, l_scr, t_scr,
                 *, s: float, n_rows: int, n_cols: int,
                 mask_rows: bool, mask_cols: bool):
    i = pl.program_id(0)          # row tile   ("parallel")
    j = pl.program_id(1)          # class tile ("arbitrary" -> online LSE)

    x = logits_ref[...].astype(jnp.float32)   # (TN, TC) upcast in-VMEM (bf16-friendly)
    t = target_ref[...]                       # (TN, 1) int32
    ml = m_ref[...].astype(jnp.float32)       # (1, TC)
    TN, TC = x.shape

    @pl.when(j == 0)
    def _():
        m_scr[...] = jnp.full_like(m_scr, -jnp.inf)   # running max
        l_scr[...] = jnp.zeros_like(l_scr)            # running sum-exp
        t_scr[...] = jnp.zeros_like(t_scr)            # target logit

    # (1, TC) class-index iota for this class tile; compare broadcasts vs (TN, 1).
    col = jax.lax.broadcasted_iota(jnp.int32, (1, TC), 1) + j * TC
    onehot = col == t                                 # (TN, TC) bool

    # Margin only applies at the target column, so batch_m = m_list[target] folds
    # directly into the select: where(onehot, x - m, x).  Then scale by s.
    z = jnp.where(onehot, x - ml, x) * jnp.float32(s)
    if mask_cols:
        # Padded class columns of the last class tile hold undefined data.
        z = jnp.where(col < n_cols, z, -jnp.inf)

    # Online (flash-style) log-sum-exp across class tiles.
    m_prev = m_scr[...]                                               # (TN, 1)
    m_new = jnp.maximum(m_prev, jnp.max(z, axis=-1, keepdims=True))   # (TN, 1)
    l_scr[...] = (l_scr[...] * jnp.exp(m_prev - m_new)
                  + jnp.sum(jnp.exp(z - m_new), axis=-1, keepdims=True))
    m_scr[...] = m_new
    # The target logit lives in exactly one class tile; accumulate its raw value.
    t_scr[...] += jnp.sum(jnp.where(onehot, z, 0.0), axis=-1, keepdims=True)

    @pl.when(j == pl.num_programs(1) - 1)
    def _():
        # cross_entropy(z, target) per row = logsumexp(z) - z[target]
        per_sample = m_scr[...] + jnp.log(l_scr[...]) - t_scr[...]    # (TN, 1)
        if mask_rows:
            row = jax.lax.broadcasted_iota(jnp.int32, (TN, 1), 0)
            per_sample = jnp.where(i * TN + row < n_rows, per_sample, 0.0)
        # Lane-dense partial-sum block for this row tile; wrapper reads [:, 0, 0].
        out_ref[...] = jnp.broadcast_to(jnp.sum(per_sample), out_ref.shape)


def ldam_loss(logits, target, m_list, s=30.0, block_rows=None, max_class_tile=2048):
    """logits: (N, C) f32/bf16, target: (N,) int, m_list: (C,) f32 -> scalar f32."""
    N, C = logits.shape
    target2d = target.reshape(N, 1).astype(jnp.int32)
    m2d = m_list.reshape(1, C).astype(jnp.float32)

    # ---- generation-aware sizing -------------------------------------------
    try:
        vmem_cap = int(pltpu.get_tpu_info().vmem_capacity_bytes)
    except Exception:
        vmem_cap = 128 * 1024 * 1024          # v5e/v6e value if the query is unavailable
    # Headroom for Mosaic internal scratch + double buffering:
    #   128 MiB parts (v5e/v6e) -> 64 MiB limit; 64 MiB part (v7x) -> 48 MiB.
    vmem_limit = int(min(64 * 1024 * 1024, vmem_cap - vmem_cap // 4))

    # Class tile: small C stays one full-width tile; large C is tiled at a clean
    # multiple of 128 lanes and reduced with the in-kernel online LSE.
    if C <= max_class_tile:
        tc = C
    else:
        tc = max(128, (max_class_tile // 128) * 128)
    num_class_tiles = pl.cdiv(C, tc)

    if block_rows is None:
        # Budget the f32 intermediates (upcast x, onehot, z, exp) per (rows, tc)
        # tile at ~vmem_cap/32: 4 MiB on 128 MiB parts, 2 MiB on v7x's 64 MiB.
        # The binding VMEM constraint is these f32 intermediates, not the
        # (possibly bf16) DMA'd tile, so the divisor stays at 4 bytes.
        tile_budget = max(1 << 20, vmem_cap // 32)
        block_rows = max(8, min(1024, tile_budget // (tc * 4)))
    # Never make the tile larger than the (8-rounded) batch, keep it 8-aligned.
    block_rows = min(block_rows, ((N + 7) // 8) * 8)
    block_rows = max(8, (block_rows // 8) * 8)
    num_row_tiles = pl.cdiv(N, block_rows)

    grid = (num_row_tiles, num_class_tiles)

    itemsize = jnp.dtype(logits.dtype).itemsize
    cost = pl.CostEstimate(
        flops=7 * N * C,
        transcendentals=N * C + N * num_class_tiles + N,   # exp per elem + rescale + log
        bytes_accessed=(N * C * itemsize + N * 4 + C * 4
                        + num_row_tiles * 8 * 128 * 4),
    )

    kernel = functools.partial(
        _ldam_kernel, s=float(s), n_rows=N, n_cols=C,
        mask_rows=(N % block_rows) != 0,
        mask_cols=(C % tc) != 0,
    )

    partials = pl.pallas_call(
        kernel,
        out_shape=jax.ShapeDtypeStruct((num_row_tiles, 8, 128), jnp.float32),
        grid=grid,
        in_specs=[
            pl.BlockSpec((block_rows, tc), lambda i, j: (i, j)),   # logits tile
            pl.BlockSpec((block_rows, 1), lambda i, j: (i, 0)),    # target tile
            pl.BlockSpec((1, tc), lambda i, j: (0, j)),            # m_list tile
        ],
        out_specs=pl.BlockSpec((1, 8, 128), lambda i, j: (i, 0, 0)),
        scratch_shapes=[
            pltpu.VMEM((block_rows, 1), jnp.float32),   # running max
            pltpu.VMEM((block_rows, 1), jnp.float32),   # running sum-exp
            pltpu.VMEM((block_rows, 1), jnp.float32),   # target logit
        ],
        compiler_params=pltpu.CompilerParams(
            dimension_semantics=("parallel", "arbitrary"),
            vmem_limit_bytes=vmem_limit,
        ),
        cost_estimate=cost,
    )(logits, target2d, m2d)

    # reduction='mean' with weight=None: single divide-as-multiply, done once.
    # (Per-tile partials are kept on all generations: megacore-friendly on v7x,
    #  measured no-op cost on single-TC v5e/v6e.)
    return jnp.sum(partials[:, 0, 0]) * jnp.float32(1.0 / N)


def make_m_list(cls_num_list, max_m=0.5):
    """Deterministic margin list, mirroring LDAMLoss.__init__."""
    m = 1.0 / np.sqrt(np.sqrt(np.asarray(cls_num_list, dtype=np.float64)))
    m = m * (max_m / np.max(m))
    return jnp.asarray(m, dtype=jnp.float32)


def _reference(logits, target, m_list, s=30.0):
    """Pure-JAX reference for sanity checking."""
    N, C = logits.shape
    onehot = jax.nn.one_hot(target, C, dtype=jnp.float32)
    batch_m = (onehot * m_list[None, :]).sum(-1, keepdims=True)
    z = jnp.where(onehot > 0, logits.astype(jnp.float32) - batch_m,
                  logits.astype(jnp.float32)) * s
    logp = jax.nn.log_softmax(z, axis=-1)
    return -jnp.mean(jnp.sum(onehot * logp, axis=-1))


if __name__ == "__main__":
    key = jax.random.PRNGKey(0)
    k1, k2, k3, k4 = jax.random.split(key, 4)

    # ---- test 1: base shape (batch=8, num_classes=16), f32 ------------------
    N, C = 8, 16
    logits = jax.random.normal(k1, (N, C), dtype=jnp.float32)
    target = jax.random.randint(k2, (N,), 0, C, dtype=jnp.int32)
    cls_num_list = [int(1000 * math.exp(-0.3 * i)) + 1 for i in range(C)]
    m_list = make_m_list(cls_num_list, max_m=0.5)

    loss = jax.block_until_ready(ldam_loss(logits, target, m_list, s=30.0))
    ref = _reference(logits, target, m_list, s=30.0)
    assert jnp.allclose(loss, ref, rtol=1e-5, atol=1e-5), (loss, ref)

    # ---- test 2: N not a multiple of the row tile (padded last row tile) ----
    N2 = 13
    logits2 = jax.random.normal(k3, (N2, C), dtype=jnp.float32)
    target2 = jax.random.randint(k4, (N2,), 0, C, dtype=jnp.int32)
    loss2 = jax.block_until_ready(
        ldam_loss(logits2, target2, m_list, s=30.0, block_rows=8))
    ref2 = _reference(logits2, target2, m_list, s=30.0)
    assert jnp.allclose(loss2, ref2, rtol=1e-5, atol=1e-5), (loss2, ref2)

    # ---- test 3: class-axis tiling with a padded last class tile ------------
    N3, C3 = 16, 300
    k5, k6 = jax.random.split(k1)
    logits3 = jax.random.normal(k5, (N3, C3), dtype=jnp.float32)
    target3 = jax.random.randint(k6, (N3,), 0, C3, dtype=jnp.int32)
    cls3 = [int(1000 * math.exp(-0.02 * i)) + 1 for i in range(C3)]
    m_list3 = make_m_list(cls3, max_m=0.5)
    loss3 = jax.block_until_ready(
        ldam_loss(logits3, target3, m_list3, s=30.0, max_class_tile=128))
    ref3 = _reference(logits3, target3, m_list3, s=30.0)
    assert jnp.allclose(loss3, ref3, rtol=1e-4, atol=1e-4), (loss3, ref3)

    # ---- test 4: bf16 logits stay bf16 on the HBM wire -----------------------
    logits_bf16 = logits.astype(jnp.bfloat16)
    loss4 = jax.block_until_ready(ldam_loss(logits_bf16, target, m_list, s=30.0))
    ref4 = _reference(logits_bf16.astype(jnp.float32), target, m_list, s=30.0)
    assert jnp.allclose(loss4, ref4, rtol=1e-4, atol=1e-4), (loss4, ref4)

    print("KERNEL_OK")
</pallas_src>

<mosaic_0001>
module attributes {stable_mosaic.version = 11 : i64} {
  func.func @_ldam_kernel(%arg0: i32, %arg1: i32, %arg2: memref<8x16xf32, #tpu.memory_space<vmem>>, %arg3: memref<8x1xi32, #tpu.memory_space<vmem>>, %arg4: memref<1x16xf32, #tpu.memory_space<vmem>>, %arg5: memref<1x8x128xf32, #tpu.memory_space<vmem>>, %arg6: memref<8x1xf32, #tpu.memory_space<vmem>>, %arg7: memref<8x1xf32, #tpu.memory_space<vmem>>, %arg8: memref<8x1xf32, #tpu.memory_space<vmem>>) attributes {dimension_semantics = [#tpu.dimension_semantics<parallel>, #tpu.dimension_semantics<arbitrary>], iteration_bounds = array<i64: 1, 1>, scalar_prefetch = 0 : i64, scratch_operands = 3 : i64, tpu.core_type = #tpu.core_type<tc>, window_params = [{transform_indices = @transform_0, window_bounds = array<i64: 8, 16>}, {transform_indices = @transform_1, window_bounds = array<i64: 8, 1>}, {transform_indices = @transform_2, window_bounds = array<i64: 1, 16>}, {transform_indices = @transform_3, window_bounds = array<i64: 1, 8, 128>}]} {
    %c0 = arith.constant 0 : index
    %c0_0 = arith.constant 0 : index
    %0 = vector.load %arg2[%c0, %c0_0] : memref<8x16xf32, #tpu.memory_space<vmem>>, vector<8x16xf32>
    %c0_1 = arith.constant 0 : index
    %c0_2 = arith.constant 0 : index
    %1 = vector.load %arg3[%c0_1, %c0_2] : memref<8x1xi32, #tpu.memory_space<vmem>>, vector<8x1xi32>
    %c0_3 = arith.constant 0 : index
    %c0_4 = arith.constant 0 : index
    %2 = vector.load %arg4[%c0_3, %c0_4] : memref<1x16xf32, #tpu.memory_space<vmem>>, vector<1x16xf32>
    %c0_i32 = arith.constant 0 : i32
    %3 = arith.cmpi eq, %arg1, %c0_i32 : i32
    %4 = arith.extui %3 : i1 to i32
    %c0_i32_5 = arith.constant 0 : i32
    %5 = arith.cmpi ne, %4, %c0_i32_5 : i32
    scf.if %5 {
      %cst_24 = arith.constant 0xFF800000 : f32
      %44 = vector.broadcast %cst_24 : f32 to vector<8x1xf32>
      %c0_25 = arith.constant 0 : index
      %c0_26 = arith.constant 0 : index
      %45 = vector.load %arg6[%c0_25, %c0_26] : memref<8x1xf32, #tpu.memory_space<vmem>>, vector<8x1xf32>
      tpu.vector_store %arg6[%c0_25, %c0_26], %44 {strides = array<i32>} : memref<8x1xf32, #tpu.memory_space<vmem>>, vector<8x1xf32>,
      %cst_27 = arith.constant 0.000000e+00 : f32
      %46 = vector.broadcast %cst_27 : f32 to vector<8x1xf32>
      %c0_28 = arith.constant 0 : index
      %c0_29 = arith.constant 0 : index
      %47 = vector.load %arg7[%c0_28, %c0_29] : memref<8x1xf32, #tpu.memory_space<vmem>>, vector<8x1xf32>
      tpu.vector_store %arg7[%c0_28, %c0_29], %46 {strides = array<i32>} : memref<8x1xf32, #tpu.memory_space<vmem>>, vector<8x1xf32>,
      %cst_30 = arith.constant 0.000000e+00 : f32
      %48 = vector.broadcast %cst_30 : f32 to vector<8x1xf32>
      %c0_31 = arith.constant 0 : index
      %c0_32 = arith.constant 0 : index
      %49 = vector.load %arg8[%c0_31, %c0_32] : memref<8x1xf32, #tpu.memory_space<vmem>>, vector<8x1xf32>
      tpu.vector_store %arg8[%c0_31, %c0_32], %48 {strides = array<i32>} : memref<8x1xf32, #tpu.memory_space<vmem>>, vector<8x1xf32>,
    } else {
    }
    %6 = tpu.iota {dimensions = array<i32: 1>} : vector<1x16xi32>
    %c16_i32 = arith.constant 16 : i32
    %7 = arith.muli %arg1, %c16_i32 : i32
    %8 = vector.broadcast %7 : i32 to vector<1x16xi32>
    %9 = arith.addi %6, %8 : vector<1x16xi32>
    %10 = vector.broadcast %9 : vector<1x16xi32> to vector<8x16xi32>
    %11 = vector.broadcast %1 : vector<8x1xi32> to vector<8x16xi32>
    %12 = arith.cmpi eq, %10, %11 : vector<8x16xi32>
    %13 = vector.broadcast %2 : vector<1x16xf32> to vector<8x16xf32>
    %14 = arith.subf %0, %13 : vector<8x16xf32>
    %15 = arith.select %12, %14, %0 : vector<8x16xi1>, vector<8x16xf32>
    %cst = arith.constant 3.000000e+01 : f32
    %16 = vector.broadcast %cst : f32 to vector<8x16xf32>
    %17 = arith.mulf %15, %16 : vector<8x16xf32>
    %c0_6 = arith.constant 0 : index
    %c0_7 = arith.constant 0 : index
    %18 = vector.load %arg6[%c0_6, %c0_7] : memref<8x1xf32, #tpu.memory_space<vmem>>, vector<8x1xf32>
    %cst_8 = arith.constant dense<0xFF800000> : vector<8xf32>
    %19 = vector.multi_reduction <maximumf>, %17, %cst_8 [1] : vector<8x16xf32> to vector<8xf32>
    %20 = vector.shape_cast %19 : vector<8xf32> to vector<8x1xf32>
    %21 = arith.maximumf %18, %20 : vector<8x1xf32>
    %c0_9 = arith.constant 0 : index
    %c0_10 = arith.constant 0 : index
    %22 = vector.load %arg7[%c0_9, %c0_10] : memref<8x1xf32, #tpu.memory_space<vmem>>, vector<8x1xf32>
    %23 = arith.subf %18, %21 : vector<8x1xf32>
    %24 = math.exp %23 : vector<8x1xf32>
    %25 = arith.mulf %22, %24 : vector<8x1xf32>
    %26 = vector.broadcast %21 : vector<8x1xf32> to vector<8x16xf32>
    %27 = arith.subf %17, %26 : vector<8x16xf32>
    %28 = math.exp %27 : vector<8x16xf32>
    %cst_11 = arith.constant dense<0.000000e+00> : vector<8xf32>
    %29 = vector.multi_reduction <add>, %28, %cst_11 [1] : vector<8x16xf32> to vector<8xf32>
    %30 = vector.shape_cast %29 : vector<8xf32> to vector<8x1xf32>
    %31 = arith.addf %25, %30 : vector<8x1xf32>
    %c0_12 = arith.constant 0 : index
    %c0_13 = arith.constant 0 : index
    %32 = vector.load %arg7[%c0_12, %c0_13] : memref<8x1xf32, #tpu.memory_space<vmem>>, vector<8x1xf32>
    tpu.vector_store %arg7[%c0_12, %c0_13], %31 {strides = array<i32>} : memref<8x1xf32, #tpu.memory_space<vmem>>, vector<8x1xf32>,
    %c0_14 = arith.constant 0 : index
    %c0_15 = arith.constant 0 : index
    %33 = vector.load %arg6[%c0_14, %c0_15] : memref<8x1xf32, #tpu.memory_space<vmem>>, vector<8x1xf32>
    tpu.vector_store %arg6[%c0_14, %c0_15], %21 {strides = array<i32>} : memref<8x1xf32, #tpu.memory_space<vmem>>, vector<8x1xf32>,
    %c0_16 = arith.constant 0 : index
    %c0_17 = arith.constant 0 : index
    %34 = vector.load %arg8[%c0_16, %c0_17] : memref<8x1xf32, #tpu.memory_space<vmem>>, vector<8x1xf32>
    %cst_18 = arith.constant 0.000000e+00 : f32
    %35 = vector.broadcast %cst_18 : f32 to vector<8x16xf32>
    %36 = arith.select %12, %17, %35 : vector<8x16xi1>, vector<8x16xf32>
    %cst_19 = arith.constant dense<0.000000e+00> : vector<8xf32>
    %37 = vector.multi_reduction <add>, %36, %cst_19 [1] : vector<8x16xf32> to vector<8xf32>
    %38 = vector.shape_cast %37 : vector<8xf32> to vector<8x1xf32>
    %39 = arith.addf %34, %38 : vector<8x1xf32>
    %c0_20 = arith.constant 0 : index
    %c0_21 = arith.constant 0 : index
    %40 = vector.load %arg8[%c0_20, %c0_21] : memref<8x1xf32, #tpu.memory_space<vmem>>, vector<8x1xf32>
    tpu.vector_store %arg8[%c0_20, %c0_21], %39 {strides = array<i32>} : memref<8x1xf32, #tpu.memory_space<vmem>>, vector<8x1xf32>,
    %c0_i32_22 = arith.constant 0 : i32
    %41 = arith.cmpi eq, %arg1, %c0_i32_22 : i32
    %42 = arith.extui %41 : i1 to i32
    %c0_i32_23 = arith.constant 0 : i32
    %43 = arith.cmpi ne, %42, %c0_i32_23 : i32
    scf.if %43 {
      %c0_24 = arith.constant 0 : index
      %c0_25 = arith.constant 0 : index
      %44 = vector.load %arg6[%c0_24, %c0_25] : memref<8x1xf32, #tpu.memory_space<vmem>>, vector<8x1xf32>
      %c0_26 = arith.constant 0 : index
      %c0_27 = arith.constant 0 : index
      %45 = vector.load %arg7[%c0_26, %c0_27] : memref<8x1xf32, #tpu.memory_space<vmem>>, vector<8x1xf32>
      %46 = math.log %45 : vector<8x1xf32>
      %47 = arith.addf %44, %46 : vector<8x1xf32>
      %c0_28 = arith.constant 0 : index
      %c0_29 = arith.constant 0 : index
      %48 = vector.load %arg8[%c0_28, %c0_29] : memref<8x1xf32, #tpu.memory_space<vmem>>, vector<8x1xf32>
      %49 = arith.subf %47, %48 : vector<8x1xf32>
      %50 = vector.shape_cast %49 : vector<8x1xf32> to vector<1x8x1xf32>
      %cst_30 = arith.constant dense<0.000000e+00> : vector<1xf32>
      %51 = vector.multi_reduction <add>, %50, %cst_30 [1, 2] : vector<1x8x1xf32> to vector<1xf32>
      %52 = vector.shape_cast %51 : vector<1xf32> to vector<1x1x1xf32>
      %53 = vector.extract %52[0, 0, 0] : f32 from vector<1x1x1xf32>
      %54 = vector.broadcast %53 : f32 to vector<1x8x128xf32>
      %c0_31 = arith.constant 0 : index
      %c0_32 = arith.constant 0 : index
      %c0_33 = arith.constant 0 : index
      %55 = vector.load %arg5[%c0_31, %c0_32, %c0_33] : memref<1x8x128xf32, #tpu.memory_space<vmem>>, vector<1x8x128xf32>
      tpu.vector_store %arg5[%c0_31, %c0_32, %c0_33], %54 {strides = array<i32>} : memref<1x8x128xf32, #tpu.memory_space<vmem>>, vector<1x8x128xf32>,
    } else {
    }
    return
  }
  func.func @transform_0(%arg0: i32, %arg1: i32) -> (i32, i32) {
    %c0_i32 = arith.constant 0 : i32
    return %arg0, %arg1 : i32, i32
  }
  func.func @transform_1(%arg0: i32, %arg1: i32) -> (i32, i32) {
    %c0_i32 = arith.constant 0 : i32
    %c0_i32_0 = arith.constant 0 : i32
    return %arg0, %c0_i32 : i32, i32
  }
  func.func @transform_2(%arg0: i32, %arg1: i32) -> (i32, i32) {
    %c0_i32 = arith.constant 0 : i32
    %c0_i32_0 = arith.constant 0 : i32
    return %c0_i32, %arg1 : i32, i32
  }
  func.func @transform_3(%arg0: i32, %arg1: i32) -> (i32, i32, i32) {
    %c0_i32 = arith.constant 0 : i32
    %c0_i32_0 = arith.constant 0 : i32
    %c0_i32_1 = arith.constant 0 : i32
    return %arg0, %c0_i32, %c0_i32_0 : i32, i32, i32
  }
}

</mosaic_0001>

<bundles_post_ra>
// kernel: tpu_custom_call.1
= control target key start
LH: loop header
LB: loop body
LE: loop exit
PB: predicated region body
PF: predicated region fallthrough
CT: control target
= control target key end

     0   :  { %8 = vsyncpa [#allocation6], 0  ;;  %s347_s0 = inlined_call_operand.hbm [shape: f32[8,16], index: 0, kind: input, shape index: {}]   ;;  %s348_s1 = inlined_call_operand.hbm [shape: s32[8,1], index: 1, kind: input, shape index: {}]   ;;  %s349_s2 = inlined_call_operand.hbm [shape: f32[1,16], index: 2, kind: input, shape index: {}]   ;;  %s350_s3 = inlined_call_operand.hbm [shape: f32[1,8,128], index: 3, kind: output, shape index: {}]  }
   0x1   :  { %9 = vsyncpa [#allocation9], 0 }
   0x2   :  { %10 = vsyncpa [#allocation7], 0  ;;  %s262_s12 = smov [#allocation8]   ;;  %s263_s14 = smov [#allocation5]  }
   0x3   :  { %s27_s13 = sshll.u32 %s262_s12, 4  ;;  %s17_s15 = sshll.u32 %s263_s14, 4  ;;  %s28_s13 = int_to_ptr.vmem [resolvable:$true] %s27_s13  ;;  %s18_s15 = int_to_ptr.vmem [resolvable:$true] %s17_s15 }
   0x4   :  { %s168_s18 = scalar_lea.hbm %s348_s1, 128 }
   0x5   :  { %p169_p0 = scmp.ne.s32.totalorder %s348_s1, %s168_s18  ;;  %p172_p1 = scmp.lt.u32.totalorder %s168_s18, %s348_s1 }
   0x7   :  { %p174_p2 = pnand %p172_p1, %p169_p0 }
   0x9   :  { %177 = shalt.err (!%p174_p2)
}
   0xa   :  { %s178_s23 = scalar_lea.vmem %s28_s13, 128  ;;  %p183_p4 = scmp.lt.s32.totalorder %s28_s13, %s28_s13 }
   0xb   :  { %p179_p3 = scmp.ne.s32.totalorder %s28_s13, %s178_s23  ;;  %p184_p5 = scmp.lt.s32.totalorder %s178_s23, %s178_s23 }
   0xd   :  { %p185_p6 = por %p184_p5, %p183_p4 }
   0xf   :  { %p186_p7 = pnand %p185_p6, %p179_p3 }
  0x11   :  { %189 = shalt.err (!%p186_p7)
}
  0x12   :  { %30 = dma.hbm_to_vmem [thread:$0]  %s348_s1, 128, %s28_s13, [#allocation9]  }
  0x13   :  { %s190_s28 = scalar_lea.hbm %s347_s0, 128 }
  0x14   :  { %p191_p8 = scmp.ne.s32.totalorder %s347_s0, %s190_s28  ;;  %p194_p9 = scmp.lt.u32.totalorder %s190_s28, %s347_s0 }
  0x16   :  { %p196_p10 = pnand %p194_p9, %p191_p8 }
  0x18   :  { %199 = shalt.err (!%p196_p10)
}
  0x19   :  { %s200_s6 = scalar_lea.vmem %s18_s15, 128  ;;  %p205_p12 = scmp.lt.s32.totalorder %s18_s15, %s18_s15 }
  0x1a   :  { %p201_p11 = scmp.ne.s32.totalorder %s18_s15, %s200_s6  ;;  %p206_p13 = scmp.lt.s32.totalorder %s200_s6, %s200_s6 }
  0x1c   :  { %p207_p0 = por %p206_p13, %p205_p12 }
  0x1e   :  { %p208_p1 = pnand %p207_p0, %p201_p11 }
  0x20   :  { %211 = shalt.err (!%p208_p1)
}
  0x21   :  { %20 = dma.hbm_to_vmem [thread:$0]  %s347_s0, 128, %s18_s15, [#allocation6]  }
  0x22   :  { %s264_s8 = smov [#allocation10]   ;;  %s212_s12 = scalar_lea.hbm %s349_s2, 16 }
  0x23   :  { %s37_s9 = sshll.u32 %s264_s8, 4  ;;  %p213_p2 = scmp.ne.s32.totalorder %s349_s2, %s212_s12  ;;  %s38_s9 = int_to_ptr.vmem [resolvable:$true] %s37_s9 }
  0x24   :  { %p216_p3 = scmp.lt.u32.totalorder %s212_s12, %s349_s2 }
  0x26   :  { %p218_p4 = pnand %p216_p3, %p213_p2 }
  0x28   :  { %221 = shalt.err (!%p218_p4)
}
  0x29   :  { %s222_s18 = scalar_lea.vmem %s38_s9, 16  ;;  %s226_s0 = scalar_lea.vmem %s38_s9, 32 }
  0x2a   :  { %p223_p5 = scmp.ne.s32.totalorder %s38_s9, %s222_s18  ;;  %p227_p6 = scmp.lt.s32.totalorder %s38_s9, %s38_s9 }
  0x2b   :  { %p228_p7 = scmp.lt.s32.totalorder %s226_s0, %s222_s18 }
  0x2d   :  { %p229_p8 = por %p228_p7, %p227_p6 }
  0x2f   :  { %p230_p9 = pnand %p229_p8, %p223_p5 }
  0x31   :  { %233 = shalt.err (!%p230_p9)
}
  0x32   :  { %40 = dma.hbm_to_vmem [thread:$0]  %s349_s2, 16, %s38_s9, [#allocation9]  }
  0x33   :  { %256 = dma.done.wait [#allocation6], 128  }
  0x34   :  { %257 = vsyncadd [#allocation6], 4294967168 }
  0x35   :  { %258 = dma.done.wait [#allocation9], 144  }
  0x36   :  { %259 = vsyncadd [#allocation9], 4294967152  ;;  %v265_v0 = vmov 0   ;;  %v51_v1 = vld [vmem:[#allocation8] sm:$0xff]  ;;  %vm57_vm0 = vcmask 7168   ;;  %v266_v2 = vmov -inf   ;;  %v61_v3 = vlaneseq }
  0x37   :  { %160 = vset.pattern.permute.xlu0 %v265_v0  ;;  %161 = vset.pattern.permute.xlu1 %v265_v0  ;;  %58 = vst.msk [vmem:[#allocation2] sm:$0xff] %vm57_vm0, %v266_v2  ;;  %v150_v4 = vld [vmem:[#allocation10] ss:$0 sm:$0xff]  ;;  %v50_v5 = vld [vmem:[#allocation5] sm:$0xff]  ;;  %vm80_vm2 = vcmask 130048   ;;  %v267_v14 = vmov 0.0  }
  0x38   :  { %67 = vperm.xlu0 %160, %v51_v1   ;;  %v62_v6 = vand.u32 127, %v61_v3  ;;  %v76_v7 = vsub.f32 %v50_v5, %v150_v4  ;;  %60 = vst.msk [vmem:[#allocation4] sm:$0xff] %vm57_vm0, %v267_v14  ;;  %59 = vst.msk [vmem:[#allocation3] sm:$0xff] %vm57_vm0, %v267_v14  ;;  %s268_s2 = smov [#allocation11]  }
  0x39   :  { %s140_s20 = sshll.u32 %s268_s2, 4  ;;  %s141_s20 = int_to_ptr.vmem [resolvable:$true] %s140_s20 }
  0x3a   :  { %s234_s22 = scalar_lea.vmem %s141_s20, 128  ;;  %p239_p11 = scmp.lt.s32.totalorder %s141_s20, %s141_s20 }
  0x3b   :  { %p235_p10 = scmp.ne.s32.totalorder %s141_s20, %s234_s22  ;;  %p240_p12 = scmp.lt.s32.totalorder %s234_s22, %s234_s22 }
  0x3d   :  { %p241_p13 = por %p240_p12, %p239_p11 }
  0x3e   :  { %v79_v15 = vld [vmem:[#allocation2] sm:$0xff] }
  0x3f   :  { %v105_v18 = vld [vmem:[#allocation4] sm:$0xff]  ;;  %v85_v29 = vld [vmem:[#allocation3] sm:$0xff]  ;;  %p242_p0 = pnand %p241_p13, %p235_p10 }
  0xb7   :  { %v68_v8 = vpop.permute.xlu0 %67 }
  0xb8   :  { %vm69_vm1 = vcmp.eq.s32.totalorder %v62_v6, %v68_v8 }
  0xb9   :  { %v77_v9 = vsel %vm69_vm1, %v76_v7, %v50_v5 }
  0xba   :  { %v78_v10 = vmul.f32 30.0, %v77_v9 }
  0xbc   :  { %v81_v11 = vsel %vm80_vm2, %v78_v10, -inf  ;;  %v106_v12 = vsel %vm69_vm1, %v78_v10, 0.0 }
  0xbd   :  { %82 = vmax.xlane.f32.xlu0 %v81_v11  ;;  %v107_v13 = vsel %vm80_vm2, %v106_v12, 0.0 }
  0xc1   :  { %108 = vadd.xlane.f32.xlu0 %v107_v13 }
 0x14a   :  { %v83_v16 = vpop.xlane.xlu0 %82 }
 0x14b   :  { %v84_v17 = vmax.f32 %v79_v15, %v83_v16 }
 0x14d   :  { %v86_v19 = vsub.f32 %v79_v15, %v84_v17  ;;  %104 = vst.msk [vmem:[#allocation2] sm:$0xff] %vm57_vm0, %v84_v17  ;;  %92 = vperm.xlu1 %161, %v84_v17  }
 0x14e   :  { %v109_v20 = vpop.xlane.xlu0 %108 }
 0x14f   :  { %v110_v21 = vadd.f32 %v109_v20, %v105_v18  ;;  %v87_v27 = vmul.f32 1.442695, %v86_v19 }
 0x151   :  { %111 = vst.msk [vmem:[#allocation4] sm:$0xff] %vm57_vm0, %v110_v21 }
 0x154   :  { %v115_v36 = vld [vmem:[#allocation2] sm:$0xff] }
 0x158   :  { %v120_v38 = vld [vmem:[#allocation4] sm:$0xff] }
 0x1cc   :  { %v93_v22 = vpop.permute.xlu1 %92 }
 0x1cd   :  { %v95_v23 = vsub.f32 %v78_v10, %v93_v22 }
 0x1cf   :  { %v96_v24 = vmul.f32 1.442695, %v95_v23 }
 0x1d1   :  { %162 = vpow2.f32 %v96_v24 }
 0x1d2   :  { %164 = vpow2.f32 %v87_v27 }
 0x1db   :  { %v163_v25 = vpop.eup %162 }
 0x1dc   :  { %v98_v26 = vsel %vm80_vm2, %v163_v25, 0.0  ;;  %v165_v28 = vpop.eup %164 }
 0x1dd   :  { %99 = vadd.xlane.f32.xlu1 %v98_v26  ;;  %v89_v30 = vmul.f32 %v165_v28, %v85_v29 }
 0x26a   :  { %v100_v31 = vpop.xlane.xlu1 %99 }
 0x26b   :  { %v101_v32 = vadd.f32 %v100_v31, %v89_v30 }
 0x26d   :  { %103 = vst.msk [vmem:[#allocation3] sm:$0xff] %vm57_vm0, %v101_v32 }
 0x274   :  { %v116_v33 = vld [vmem:[#allocation3] sm:$0xff] }
 0x275   :  { %166 = vlog2.f32 %v116_v33 }
 0x27f   :  { %v167_v34 = vpop.eup %166 }
 0x280   :  { %v118_v35 = vmul.f32 0.6931472, %v167_v34 }
 0x282   :  { %v119_v37 = vadd.f32 %v118_v35, %v115_v36 }
 0x284   :  { %v121_v39 = vsub.f32 %v119_v37, %v120_v38 }
 0x286   :  { %v122_v40 = vsel %vm57_vm0, %v121_v39, 0.0 }
 0x287   :  { %123 = vadd.xlane.f32.xlu0 %v122_v40 }
 0x314   :  { %v124_v41 = vpop.xlane.xlu0 %123 }
 0x315   :  { %v125_v42 = vrot.slane %v124_v41, 4 }
 0x317   :  { %v126_v43 = vadd.f32 %v125_v42, %v124_v41 }
 0x319   :  { %v127_v44 = vrot.slane %v126_v43, 2 }
 0x31b   :  { %v128_v45 = vadd.f32 %v127_v44, %v126_v43 }
 0x31d   :  { %v129_v46 = vrot.slane %v128_v45, 1 }
 0x31f   :  { %v130_v47 = vadd.f32 %v129_v46, %v128_v45 }
 0x321   :  { %151 = vpush %v130_v47 }
 0x352   :  { %s152_s21 = spop %151 }
 0x353   :  { %v132_v48 = vstv %s152_s21 }
 0x354   :  { %133 = vst [vmem:[#allocation11] sm:$0xff] %v132_v48 }
 0x355   :  { %245 = shalt.err (!%p242_p0)
}
 0x356   :  { %s246_s25 = scalar_lea.hbm %s350_s3, 128 }
 0x357   :  { %p247_p1 = scmp.ne.s32.totalorder %s350_s3, %s246_s25  ;;  %p250_p2 = scmp.lt.u32.totalorder %s246_s25, %s350_s3 }
 0x359   :  { %p252_p3 = pnand %p250_p2, %p247_p1 }
 0x35b   :  { %255 = shalt.err (!%p252_p3)
}
 0x35c   :  { %143 = dma.vmem_to_hbm [thread:$0]  %s141_s20, 128, %s350_s3, [#allocation7]  }
 0x35d   :  { %260 = dma.done.wait [#allocation7], 128  }
 0x35e   :  { %261 = vsyncadd [#allocation7], 4294967168 }
 0x35f   :  { %147 = vsyncpa [#allocation6], 1 }
 0x360   :  { %148 = vsyncpa [#allocation9], 1 }
 0x361   :  { %149 = vsyncpa [#allocation7], 1 }

</bundles_post_ra>
